<compile_context>
chip_gen: v7x
topology: tpu7x:2x2x1
jax: 0.10.0
libtpu: 0.0.40
codegen_flags: <defaults>
</compile_context>

<pallas_src>
import functools

import jax
import jax.numpy as jnp
from jax.experimental import pallas as pl
from jax.experimental.pallas import tpu as pltpu


_SQRT2_INV = 0.7071067811865476  # 1/sqrt(2)


def _gelu_exact(x):
    # Matches PyTorch F.gelu default (erf formulation); computed in f32.
    return 0.5 * x * (1.0 + jax.lax.erf(x * _SQRT2_INV))


def _gelu_tanh(x):
    # tanh-approximate GELU (EUP path); optional, not the PyTorch default.
    c = 0.7978845608028654  # sqrt(2/pi)
    return 0.5 * x * (1.0 + jnp.tanh(c * (x + 0.044715 * x * x * x)))


def _round_up(x, m):
    return ((x + m - 1) // m) * m


# -----------------------------------------------------------------------------
# Kernel
# -----------------------------------------------------------------------------
def _make_kernel(chunk_bounds, approximate_gelu):
    act = _gelu_tanh if approximate_gelu else _gelu_exact

    def kernel(x_ref, w1_ref, b1_ref, w2_ref, b2_ref, o_ref):
        # Cast the streamed activation tile to the MXU operand dtype in-kernel
        # (avoids a separate cast pass over HBM in the wrapper).
        x = x_ref[...].astype(w1_ref.dtype)                      # [tile, D_in]
        acc = None
        # Static (unrolled) loop over hidden chunks: keeps the f32 hidden
        # intermediate small and overlaps GELU(c) with the MXU work of c+1.
        for c0, c1 in chunk_bounds:
            h = jnp.dot(x, w1_ref[:, c0:c1],
                        preferred_element_type=jnp.float32)      # [tile, ck] f32
            h = act(h + b1_ref[:, c0:c1])                        # f32 bias + GELU
            yc = jnp.dot(h.astype(w2_ref.dtype), w2_ref[c0:c1, :],
                         preferred_element_type=jnp.float32)     # [tile, D_out]
            acc = yc if acc is None else acc + yc
        o_ref[...] = (acc + b2_ref[...]).astype(o_ref.dtype)

    return kernel


# -----------------------------------------------------------------------------
# One-time parameter preparation (hoisted out of the per-call path)
# -----------------------------------------------------------------------------
def prepare_nonlinear_head_params(w1, b1, w2, b2, *, compute_dtype=None):
    """Transpose / pad / cast nn.Linear params once at model init.

    w1: [hidden, d_in], b1: [hidden], w2: [d_out, hidden], b2: [d_out]
    (PyTorch nn.Linear layout).

    Returns (w1p, b1p, w2p, b2p) with the hidden dim zero-padded to a multiple
    of 128 (exact: GELU(0)=0, padded W2 rows / biases are zero).  Matmul
    operands use `compute_dtype` (default: the weights' dtype); biases stay f32.
    """
    hidden, d_in = w1.shape
    d_out = w2.shape[0]
    op_dtype = jnp.dtype(compute_dtype) if compute_dtype is not None else jnp.dtype(w1.dtype)
    h_p = _round_up(hidden, 128)

    w1p = jnp.zeros((d_in, h_p), op_dtype).at[:, :hidden].set(w1.T.astype(op_dtype))
    b1p = jnp.zeros((1, h_p), jnp.float32).at[0, :hidden].set(b1.astype(jnp.float32))
    w2p = jnp.zeros((h_p, d_out), op_dtype).at[:hidden, :].set(w2.T.astype(op_dtype))
    b2p = b2.astype(jnp.float32).reshape(1, d_out)
    return w1p, b1p, w2p, b2p


# -----------------------------------------------------------------------------
# Wrapper
# -----------------------------------------------------------------------------
def nonlinear_head(x, w1p, b1p, w2p, b2p, *, tm=512, hidden_chunk=512,
                   approximate_gelu=False):
    """Linear -> GELU -> Linear.

    x:    [..., d_in]   (leading dims flattened to rows)
    w1p, b1p, w2p, b2p: prepared via `prepare_nonlinear_head_params`.
    """
    orig_shape = x.shape
    d_in = orig_shape[-1]
    M = 1
    for s in orig_shape[:-1]:
        M *= s
    x2 = x.reshape(M, d_in)

    assert w1p.shape[0] == d_in, "w1p must be [d_in, hidden_padded]"
    h_p = w1p.shape[1]
    d_out = w2p.shape[1]
    out_dtype = x.dtype

    op_b = jnp.dtype(w1p.dtype).itemsize
    x_b = jnp.dtype(x.dtype).itemsize
    out_b = jnp.dtype(out_dtype).itemsize

    # Hidden-chunk width: lane-aligned multiple of 128, capped by h_p.
    ck = min(h_p, max(128, _round_up(min(hidden_chunk, h_p), 128)))

    # Row tile: big tiles to amortize the ~0.35us/step grid overhead; ragged
    # tails are handled by the grid edge (no row padding of x).
    tile = max(8, min(_round_up(tm, 8), _round_up(M, 8)))

    def vmem_budget(t):
        # Pipeline double-buffers every input, including constant-index weights.
        weights = 2 * (d_in * h_p + h_p * d_out) * op_b
        biases = 2 * (h_p + d_out) * 4
        io = 2 * t * d_in * x_b + 2 * t * d_out * out_b          # x / out double buffers
        interm = (t * d_in * op_b                                # x cast to operand dtype
                  + 3 * t * ck * 4 + t * ck * op_b               # h f32, GELU temps, h cast
                  + 2 * t * d_out * 4)                           # y accumulator + bias add
        return weights + biases + io + interm

    # Per-generation VMEM cap (~54 MiB on v7x, ~108 MiB on v6e/v5e).
    try:
        cap = int(0.85 * pltpu.get_tpu_info().vmem_capacity_bytes)
    except Exception:  # conservative fallback, safe on every generation
        cap = 48 << 20

    while vmem_budget(tile) > cap and tile > 8:
        tile = max(8, _round_up(tile // 2, 8))
    # TODO(synk): for hidden sizes whose (double-buffered) weights exceed the
    # VMEM cap even at tile=8, add a hidden-chunk grid axis ("arbitrary") with
    # an f32 [tile, d_out] accumulator instead of keeping W1/W2 fully resident.

    grid_m = pl.cdiv(M, tile)
    vmem_limit = int(min(cap, max(16 << 20, int(1.25 * vmem_budget(tile)))))

    chunk_bounds = tuple((c, min(c + ck, h_p)) for c in range(0, h_p, ck))
    kernel = _make_kernel(chunk_bounds, approximate_gelu)

    out = pl.pallas_call(
        kernel,
        out_shape=jax.ShapeDtypeStruct((M, d_out), out_dtype),
        grid_spec=pltpu.PrefetchScalarGridSpec(
            num_scalar_prefetch=0,
            grid=(grid_m,),
            in_specs=[
                pl.BlockSpec((tile, d_in), lambda i: (i, 0)),     # x (streamed)
                pl.BlockSpec((d_in, h_p), lambda i: (0, 0)),      # W1 (resident)
                pl.BlockSpec((1, h_p), lambda i: (0, 0)),         # b1 (resident)
                pl.BlockSpec((h_p, d_out), lambda i: (0, 0)),     # W2 (resident)
                pl.BlockSpec((1, d_out), lambda i: (0, 0)),       # b2 (resident)
            ],
            out_specs=pl.BlockSpec((tile, d_out), lambda i: (i, 0)),
        ),
        compiler_params=pltpu.CompilerParams(
            dimension_semantics=("parallel",),
            vmem_limit_bytes=vmem_limit,
        ),
    )(x2, w1p, b1p, w2p, b2p)

    return out.reshape(orig_shape[:-1] + (d_out,))


# -----------------------------------------------------------------------------
# Pure-JAX reference (PyTorch semantics: x @ W1.T + b1 -> GELU -> x @ W2.T + b2)
# -----------------------------------------------------------------------------
def nonlinear_head_ref(x, w1, b1, w2, b2):
    xf = x.astype(jnp.float32)
    h = xf @ w1.T.astype(jnp.float32) + b1.astype(jnp.float32)
    h = _gelu_exact(h)
    y = h @ w2.T.astype(jnp.float32) + b2.astype(jnp.float32)
    return y.astype(x.dtype)


if __name__ == "__main__":
    # NonLinearHead(input_dim=32, out_dim=16, activation_fn="gelu");
    # hidden defaults to input_dim. Input shaped [batch=2, seq=8, input_dim].
    input_dim, out_dim = 32, 16
    hidden = input_dim
    batch, seq = 2, 8

    key = jax.random.PRNGKey(0)
    kx, k1, kb1, k2, kb2 = jax.random.split(key, 5)

    x = jax.random.normal(kx, (batch, seq, input_dim), dtype=jnp.float32)
    # nn.Linear weights are [out, in].
    w1 = jax.random.normal(k1, (hidden, input_dim), dtype=jnp.float32) * 0.05
    b1 = jax.random.normal(kb1, (hidden,), dtype=jnp.float32) * 0.05
    w2 = jax.random.normal(k2, (out_dim, hidden), dtype=jnp.float32) * 0.05
    b2 = jax.random.normal(kb2, (out_dim,), dtype=jnp.float32) * 0.05

    ref = nonlinear_head_ref(x, w1, b1, w2, b2)

    # f32 MXU operands: numerically faithful to the PyTorch module.
    p_f32 = prepare_nonlinear_head_params(w1, b1, w2, b2)
    out_f32 = jax.block_until_ready(nonlinear_head(x, *p_f32))
    assert out_f32.shape == (batch, seq, out_dim)
    assert jnp.allclose(out_f32, ref, atol=1e-5, rtol=1e-5), "f32 mismatch"

    # bf16 MXU operands with f32 accumulation / bias / GELU (fast path).
    p_bf16 = prepare_nonlinear_head_params(w1, b1, w2, b2, compute_dtype=jnp.bfloat16)
    out_bf16 = jax.block_until_ready(nonlinear_head(x, *p_bf16))
    assert out_bf16.shape == (batch, seq, out_dim)
    assert jnp.allclose(out_bf16, ref, atol=3e-2, rtol=3e-2), "bf16 mismatch"

    print("KERNEL_OK")
</pallas_src>

<mosaic_0001>
module attributes {stable_mosaic.version = 11 : i64} {
  func.func @kernel(%arg0: i32, %arg1: memref<16x32xf32, #tpu.memory_space<vmem>>, %arg2: memref<32x128xf32, #tpu.memory_space<vmem>>, %arg3: memref<1x128xf32, #tpu.memory_space<vmem>>, %arg4: memref<128x16xf32, #tpu.memory_space<vmem>>, %arg5: memref<1x16xf32, #tpu.memory_space<vmem>>, %arg6: memref<16x16xf32, #tpu.memory_space<vmem>>) attributes {dimension_semantics = [#tpu.dimension_semantics<parallel>], iteration_bounds = array<i64: 1>, scalar_prefetch = 0 : i64, scratch_operands = 0 : i64, tpu.core_type = #tpu.core_type<tc>, window_params = [{transform_indices = @transform_0, window_bounds = array<i64: 16, 32>}, {pipeline_mode = #tpu.pipeline_mode<synchronous>, transform_indices = @transform_1, window_bounds = array<i64: 32, 128>}, {pipeline_mode = #tpu.pipeline_mode<synchronous>, transform_indices = @transform_2, window_bounds = array<i64: 1, 128>}, {pipeline_mode = #tpu.pipeline_mode<synchronous>, transform_indices = @transform_3, window_bounds = array<i64: 128, 16>}, {pipeline_mode = #tpu.pipeline_mode<synchronous>, transform_indices = @transform_4, window_bounds = array<i64: 1, 16>}, {transform_indices = @transform_5, window_bounds = array<i64: 16, 16>}]} {
    %c0 = arith.constant 0 : index
    %c0_0 = arith.constant 0 : index
    %0 = vector.load %arg1[%c0, %c0_0] : memref<16x32xf32, #tpu.memory_space<vmem>>, vector<16x32xf32>
    %c0_1 = arith.constant 0 : index
    %c0_2 = arith.constant 0 : index
    %1 = vector.load %arg2[%c0_1, %c0_2] : memref<32x128xf32, #tpu.memory_space<vmem>>, vector<32x128xf32>
    %cst = arith.constant dense<0.000000e+00> : vector<16x128xf32>
    %2 = tpu.matmul %0, %1, %cst {dimension_numbers = #tpu.dot_dimension_numbers<[1], [0], [0], [1], [0, 0, 1, 1], [], []>} : vector<16x32xf32>, vector<32x128xf32>, vector<16x128xf32> -> vector<16x128xf32>
    %c0_3 = arith.constant 0 : index
    %c0_4 = arith.constant 0 : index
    %3 = vector.load %arg3[%c0_3, %c0_4] : memref<1x128xf32, #tpu.memory_space<vmem>>, vector<1x128xf32>
    %4 = vector.broadcast %3 : vector<1x128xf32> to vector<16x128xf32>
    %5 = arith.addf %2, %4 : vector<16x128xf32>
    %cst_5 = arith.constant 5.000000e-01 : f32
    %6 = vector.broadcast %cst_5 : f32 to vector<16x128xf32>
    %7 = arith.mulf %6, %5 : vector<16x128xf32>
    %cst_6 = arith.constant 0.707106769 : f32
    %8 = vector.broadcast %cst_6 : f32 to vector<16x128xf32>
    %9 = arith.mulf %5, %8 : vector<16x128xf32>
    %10 = math.erf %9 : vector<16x128xf32>
    %cst_7 = arith.constant 1.000000e+00 : f32
    %11 = vector.broadcast %cst_7 : f32 to vector<16x128xf32>
    %12 = arith.addf %11, %10 : vector<16x128xf32>
    %13 = arith.mulf %7, %12 : vector<16x128xf32>
    %c0_8 = arith.constant 0 : index
    %c0_9 = arith.constant 0 : index
    %14 = vector.load %arg4[%c0_8, %c0_9] : memref<128x16xf32, #tpu.memory_space<vmem>>, vector<128x16xf32>
    %cst_10 = arith.constant dense<0.000000e+00> : vector<16x16xf32>
    %15 = tpu.matmul %13, %14, %cst_10 {dimension_numbers = #tpu.dot_dimension_numbers<[1], [0], [0], [1], [0, 0, 1, 1], [], []>} : vector<16x128xf32>, vector<128x16xf32>, vector<16x16xf32> -> vector<16x16xf32>
    %c0_11 = arith.constant 0 : index
    %c0_12 = arith.constant 0 : index
    %16 = vector.load %arg5[%c0_11, %c0_12] : memref<1x16xf32, #tpu.memory_space<vmem>>, vector<1x16xf32>
    %17 = vector.broadcast %16 : vector<1x16xf32> to vector<16x16xf32>
    %18 = arith.addf %15, %17 : vector<16x16xf32>
    %c0_13 = arith.constant 0 : index
    %c0_14 = arith.constant 0 : index
    %19 = vector.load %arg6[%c0_13, %c0_14] : memref<16x16xf32, #tpu.memory_space<vmem>>, vector<16x16xf32>
    tpu.vector_store %arg6[%c0_13, %c0_14], %18 {strides = array<i32>} : memref<16x16xf32, #tpu.memory_space<vmem>>, vector<16x16xf32>,
    return
  }
  func.func @transform_0(%arg0: i32) -> (i32, i32) {
    %c0_i32 = arith.constant 0 : i32
    %c0_i32_0 = arith.constant 0 : i32
    return %arg0, %c0_i32 : i32, i32
  }
  func.func @transform_1(%arg0: i32) -> (i32, i32) {
    %c0_i32 = arith.constant 0 : i32
    %c0_i32_0 = arith.constant 0 : i32
    %c0_i32_1 = arith.constant 0 : i32
    return %c0_i32, %c0_i32_0 : i32, i32
  }
  func.func @transform_2(%arg0: i32) -> (i32, i32) {
    %c0_i32 = arith.constant 0 : i32
    %c0_i32_0 = arith.constant 0 : i32
    %c0_i32_1 = arith.constant 0 : i32
    return %c0_i32, %c0_i32_0 : i32, i32
  }
  func.func @transform_3(%arg0: i32) -> (i32, i32) {
    %c0_i32 = arith.constant 0 : i32
    %c0_i32_0 = arith.constant 0 : i32
    %c0_i32_1 = arith.constant 0 : i32
    return %c0_i32, %c0_i32_0 : i32, i32
  }
  func.func @transform_4(%arg0: i32) -> (i32, i32) {
    %c0_i32 = arith.constant 0 : i32
    %c0_i32_0 = arith.constant 0 : i32
    %c0_i32_1 = arith.constant 0 : i32
    return %c0_i32, %c0_i32_0 : i32, i32
  }
  func.func @transform_5(%arg0: i32) -> (i32, i32) {
    %c0_i32 = arith.constant 0 : i32
    %c0_i32_0 = arith.constant 0 : i32
    return %arg0, %c0_i32 : i32, i32
  }
}

</mosaic_0001>

<bundles_post_ra>
// kernel: tpu_custom_call.1
= control target key start
LH: loop header
LB: loop body
LE: loop exit
PB: predicated region body
PF: predicated region fallthrough
CT: control target
= control target key end

     0   :  { %vm34_vm0 = vcmask 261120   ;;  %s507_s0 = inlined_call_operand.vmem [shape: f32[16,32], index: 0, kind: input, shape index: {}]   ;;  %s508_s1 = inlined_call_operand.vmem [shape: f32[32,128], index: 1, kind: input, shape index: {}]   ;;  %s509_s2 = inlined_call_operand.vmem [shape: f32[1,128], index: 2, kind: input, shape index: {}]   ;;  %s510_s3 = inlined_call_operand.vmem [shape: f32[128,16], index: 3, kind: input, shape index: {}]   ;;  %s511_s4 = inlined_call_operand.vmem [shape: f32[1,16], index: 4, kind: input, shape index: {}]   ;;  %s512_s5 = inlined_call_operand.hbm [shape: f32[16,16], index: 5, kind: output, shape index: {}]  }
   0x1   :  { %v23_v0 = vld [vmem:[%s508_s1] sm:$0xff]  ;;  %v24_v1 = vld [vmem:[%s508_s1 + $0x8] sm:$0xff]  ;;  %v25_v2 = vld [vmem:[%s508_s1 + $0x10] sm:$0xff] }
   0x2   :  { %v317_v3 = vpack.c.bf16 %v24_v1, %v23_v0  ;;  %v26_v4 = vld [vmem:[%s508_s1 + $0x18] sm:$0xff]  ;;  %v21_v5 = vld [vmem:[%s507_s0] sm:$0xff]  ;;  %v127_v8 = vld [vmem:[%s510_s3 + $0x8] sm:$0xff] }
   0x3   :  { %v321_v6 = vpack.c.bf16 %v26_v4, %v25_v2  ;;  %279 = vmatprep.mubr.msk.f32.mxu0 %vm34_vm0, %v21_v5  ;;  %v126_v7 = vld [vmem:[%s510_s3] sm:$0xff]  ;;  %v128_v9 = vld [vmem:[%s510_s3 + $0x10] sm:$0xff]  ;;  %v129_v11 = vld [vmem:[%s510_s3 + $0x18] sm:$0xff] }
   0x4   :  { %318 = vmatprep.subr.bf16.mxu0 %v317_v3  ;;  %v325_v10 = vpack.c.bf16 %v127_v8, %v126_v7  ;;  %v329_v12 = vpack.c.bf16 %v129_v11, %v128_v9  ;;  %v130_v13 = vld [vmem:[%s510_s3 + $0x20] sm:$0xff]  ;;  %v131_v14 = vld [vmem:[%s510_s3 + $0x28] sm:$0xff] }
   0x5   :  { %320 = vmatpush3.bf16.msra.mxu0 %v317_v3 }
   0x6   :  { %10 = vsyncpa [#allocation3], 0  ;;  %322 = vmatprep.subr.bf16.mxu0 %v321_v6  ;;  %326 = vmatprep.subr.bf16.mxu1 %v325_v10  ;;  %v333_v15 = vpack.c.bf16 %v131_v14, %v130_v13  ;;  %v22_v16 = vld [vmem:[%s507_s0 + $0x8] sm:$0xff]  ;;  %v132_v17 = vld [vmem:[%s510_s3 + $0x30] sm:$0xff]  ;;  %s388_s11 = smov [#allocation2]   ;;  %vm224_vm1 = vcmask 130048  }
   0x7   :  { %328 = vmatpush3.bf16.msra.mxu1 %v325_v10  ;;  %v133_v18 = vld [vmem:[%s510_s3 + $0x38] sm:$0xff]  ;;  %v134_v20 = vld [vmem:[%s510_s3 + $0x40] sm:$0xff]  ;;  %v135_v21 = vld [vmem:[%s510_s3 + $0x48] sm:$0xff]  ;;  %s232_s12 = sshll.u32 %s388_s11, 4  ;;  %s233_s12 = int_to_ptr.vmem [resolvable:$true] %s232_s12 }
   0x8   :  { %330 = vmatprep.subr.bf16.mxu1 %v329_v12  ;;  %v337_v19 = vpack.c.bf16 %v133_v18, %v132_v17  ;;  %v341_v22 = vpack.c.bf16 %v135_v21, %v134_v20  ;;  %v136_v23 = vld [vmem:[%s510_s3 + $0x50] sm:$0xff]  ;;  %v137_v24 = vld [vmem:[%s510_s3 + $0x58] sm:$0xff]  ;;  %v138_v26 = vld [vmem:[%s510_s3 + $0x60] sm:$0xff]  ;;  %s364_s13 = scalar_lea.vmem %s233_s12, 256  ;;  %p369_p1 = scmp.lt.s32.totalorder %s233_s12, %s233_s12 }
   0x9   :  { %324 = vmatpush3.bf16.msra.mxu0 %v321_v6  ;;  %v345_v25 = vpack.c.bf16 %v137_v24, %v136_v23  ;;  %v139_v27 = vld [vmem:[%s510_s3 + $0x68] sm:$0xff]  ;;  %v140_v29 = vld [vmem:[%s510_s3 + $0x70] sm:$0xff]  ;;  %v141_v30 = vld [vmem:[%s510_s3 + $0x78] sm:$0xff]  ;;  %p365_p0 = scmp.ne.s32.totalorder %s233_s12, %s364_s13  ;;  %p370_p2 = scmp.lt.s32.totalorder %s364_s13, %s364_s13 }
   0xa   :  { %v349_v28 = vpack.c.bf16 %v139_v27, %v138_v26  ;;  %v353_v31 = vpack.c.bf16 %v141_v30, %v140_v29  ;;  %v243_v32 = vld [vmem:[%s509_s2] ss:$0 sm:$0xff] }
   0xb   :  { %332 = vmatpush3.bf16.msra.mxu1 %v329_v12  ;;  %v246_v47 = vld [vmem:[%s511_s4] ss:$0 sm:$0xff]  ;;  %p371_p3 = por %p370_p2, %p369_p1 }
   0xc   :  { %280 = vmatmul.mubr.msk.f32.vlgmr.msra.gmra.mrb[0].mxu0 %vm34_vm0, %v22_v16  ;;  %334 = vmatprep.subr.bf16.mxu1 %v333_v15 }
   0xd   :  { %p372_p4 = pnand %p371_p3, %p365_p0 }
   0xf   :  { %336 = vmatpush3.bf16.msra.mxu1 %v333_v15 }
  0x10   :  { %338 = vmatprep.subr.bf16.mxu1 %v337_v19 }
  0x13   :  { %340 = vmatpush3.bf16.msra.mxu1 %v337_v19 }
  0x14   :  { %342 = vmatprep.subr.bf16.mxu1 %v341_v22 }
  0x17   :  { %344 = vmatpush3.bf16.msra.mxu1 %v341_v22 }
  0x18   :  { %346 = vmatprep.subr.bf16.mxu1 %v345_v25 }
  0x1b   :  { %348 = vmatpush3.bf16.msra.mxu1 %v345_v25 }
  0x1c   :  { %350 = vmatprep.subr.bf16.mxu1 %v349_v28 }
  0x1f   :  { %352 = vmatpush3.bf16.msra.mxu1 %v349_v28 }
  0x20   :  { %354 = vmatprep.subr.bf16.mxu1 %v353_v31 }
  0x23   :  { %356 = vmatpush3.bf16.msra.mxu1 %v353_v31 }
  0xdf   :  { %v281_v33 = vpop.f32.mrb[0].mxu0 }
  0xe0   :  { %v113_v34 = vadd.f32 %v281_v33, %v243_v32  ;;  %v107_v35 = vpop.f32.mrb[1].mxu0 }
  0xe1   :  { %v108_v36 = vadd.f32 %v243_v32, %v107_v35 }
  0xe2   :  { %v119_v37 = vmul.f32 0.70710677, %v113_v34  ;;  %v117_v44 = vmul.f32 0.5, %v113_v34 }
  0xe3   :  { %v118_v38 = vmul.f32 0.70710677, %v108_v36  ;;  %v116_v42 = vmul.f32 0.5, %v108_v36 }
  0xe4   :  { %360 = verf.f32 %v119_v37 }
  0xe5   :  { %362 = verf.f32 %v118_v38 }
  0xee   :  { %v361_v39 = vpop.eup %360 }
  0xef   :  { %v363_v40 = vpop.eup %362  ;;  %v123_v41 = vadd.f32 1.0, %v361_v39 }
  0xf0   :  { %v122_v43 = vadd.f32 1.0, %v363_v40 }
  0xf1   :  { %v125_v46 = vmul.f32 %v123_v41, %v117_v44 }
  0xf2   :  { %v124_v45 = vmul.f32 %v122_v43, %v116_v42 }
  0xf4   :  { %314 = vmatprep.mubr.f32.mxu1 %v124_v45 }
  0xf5   :  { %315 = vmatmul.mubr.f32.vlgmr.msra.gmra.mrb[0].mxu1 %v125_v46 }
 0x1c8   :  { %v316_v48 = vpop.f32.mrb[0].mxu1 }
 0x1c9   :  { %v221_v49 = vadd.f32 %v316_v48, %v246_v47  ;;  %v215_v50 = vpop.f32.mrb[1].mxu1 }
 0x1ca   :  { %v216_v51 = vadd.f32 %v246_v47, %v215_v50 }
 0x1cb   :  { %226 = vst.msk [vmem:[#allocation2 + $0x8] sm:$0xff] %vm224_vm1, %v221_v49 }
 0x1cc   :  { %225 = vst.msk [vmem:[#allocation2] sm:$0xff] %vm224_vm1, %v216_v51 }
 0x1cd   :  { %375 = shalt.err (!%p372_p4)
}
 0x1ce   :  { %s376_s4 = scalar_lea.hbm %s512_s5, 256 }
 0x1cf   :  { %p377_p5 = scmp.ne.s32.totalorder %s512_s5, %s376_s4  ;;  %p380_p6 = scmp.lt.u32.totalorder %s376_s4, %s512_s5 }
 0x1d1   :  { %p382_p7 = pnand %p380_p6, %p377_p5 }
 0x1d3   :  { %385 = shalt.err (!%p382_p7)
}
 0x1d4   :  { %s389_s20 = smov 128   ;;  %s390_s21 = smov 8  }
 0x1d5   :  { %238 = dma.vmem_to_hbm [thread:$0]  %s233_s12, 256, %s512_s5, [#allocation3], %s389_s20, %s389_s20, %s390_s21  }
 0x1d6   :  { %386 = dma.done.wait [#allocation3], 256  }
 0x1d7   :  { %387 = vsyncadd [#allocation3], 4294967040 }
 0x1d8   :  { %242 = vsyncpa [#allocation3], 1 }

</bundles_post_ra>
